<compile_context>
chip_gen: v6e
topology: v6e:2x2x1
jax: 0.10.0
libtpu: 0.0.40
codegen_flags: <defaults>
</compile_context>

<pallas_src>
import jax
import jax.numpy as jnp
import numpy as np
from jax.experimental import pallas as pl
from jax.experimental.pallas import tpu as pltpu


# ----------------------------------------------------------------------------
# Fused Pallas kernel
# ----------------------------------------------------------------------------
def _make_decoder_kernel(L, K, U):
    """Whole decoder (L DCGRU layers + projection) for one row-chunk."""

    def cheb_concat(S, v):
        # [T_0 v | T_1 v | ... | T_K v]  concatenated along lanes (m-major).
        outs = [v]
        if K >= 1:
            v1 = jnp.dot(S, v, preferred_element_type=jnp.float32)
            outs.append(v1)
            vm2, vm1 = v, v1
            for _ in range(2, K + 1):
                v2 = 2.0 * jnp.dot(S, vm1,
                                   preferred_element_type=jnp.float32) - vm2
                outs.append(v2)
                vm2, vm1 = vm1, v2
        return jnp.concatenate(outs, axis=1) if len(outs) > 1 else outs[0]

    def kernel(s_ref, x_ref, h_ref, *refs):
        # refs = [Wg_0, bg_0, Wc_0, bc_0, ..., Wg_{L-1}, ..., Wp, bp,
        #         out_ref, hout_ref]
        w_refs = refs[:4 * L]
        wp_ref = refs[4 * L]
        bp_ref = refs[4 * L + 1]
        out_ref = refs[4 * L + 2]
        hout_ref = refs[4 * L + 3]

        S = s_ref[...]                                   # (R, R) block-diag
        out = x_ref[...].astype(jnp.float32)             # (R, Din_0)

        for l in range(L):
            wg, bg, wc, bc = w_refs[4 * l:4 * l + 4]
            h = h_ref[l].astype(jnp.float32)             # (R, U)

            # gate gconv: one wide-K dot producing r and u together
            cat = jnp.concatenate([out, h], axis=1)      # (R, D)
            A = cheb_concat(S, cat)                      # (R, M*D)
            g = jax.nn.sigmoid(
                jnp.dot(A, wg[...], preferred_element_type=jnp.float32)
                + bg[...])                               # (R, 2U)
            r = g[:, :U]
            u = g[:, U:]

            # candidate gconv on (inputs, r*h)
            cat2 = jnp.concatenate([out, r * h], axis=1)
            A2 = cheb_concat(S, cat2)
            c = jnp.tanh(
                jnp.dot(A2, wc[...], preferred_element_type=jnp.float32)
                + bc[...])                               # (R, U)

            h_new = u * h + (1.0 - u) * c
            hout_ref[l] = h_new.astype(hout_ref.dtype)
            out = h_new                                  # dropout p=0 -> id

        proj = jnp.dot(out, wp_ref[...],
                       preferred_element_type=jnp.float32) + bp_ref[...]
        out_ref[...] = proj.astype(out_ref.dtype)

    return kernel


def decoder_forward_pallas(inputs, hidden_state, adj, kernel_layers, Wp, bp,
                           *, num_nodes, rnn_units, num_classes, K,
                           row_chunks=None):
    """inputs (B, N*C), hidden_state (L, B, N*U), adj (N, N)."""
    B = inputs.shape[0]
    L = hidden_state.shape[0]
    N, U, C = num_nodes, rnn_units, num_classes

    if row_chunks is None:
        row_chunks = 2 if B % 2 == 0 else 1   # 2-way parallel axis (v7x megacore)
    assert B % row_chunks == 0
    Bc = B // row_chunks
    R = Bc * N                                # rows handled per grid step

    S = random_walk_support(adj)                               # (N, N)
    S_chunk = jnp.kron(jnp.eye(Bc, dtype=jnp.float32), S)      # (R, R)

    x = inputs.reshape(B * N, C)
    h = hidden_state.reshape(L, B * N, U)

    flat_w = []
    for (Wg, bg, Wc, bc) in kernel_layers:
        flat_w += [Wg, bg, Wc, bc]

    kernel = _make_decoder_kernel(L=L, K=K, U=U)

    def full(shape):
        return pl.BlockSpec(shape, lambda g, _n=len(shape): (0,) * _n)

    in_specs = (
        [full(S_chunk.shape),
         pl.BlockSpec((R, C), lambda g: (g, 0)),
         pl.BlockSpec((L, R, U), lambda g: (0, g, 0))]
        + [full(w.shape) for w in flat_w]
        + [full(Wp.shape), full((1, C))]
    )
    out_specs = [
        pl.BlockSpec((R, C), lambda g: (g, 0)),
        pl.BlockSpec((L, R, U), lambda g: (0, g, 0)),
    ]
    # TODO(synk): output tile is only C=4 lanes wide (masked stores); negligible
    # at this size but a lane-dense (B, N*C) out layout would be preferable for
    # larger C*N.
    out, hout = pl.pallas_call(
        kernel,
        grid=(row_chunks,),
        in_specs=in_specs,
        out_specs=out_specs,
        out_shape=(jax.ShapeDtypeStruct((B * N, C), jnp.float32),
                   jax.ShapeDtypeStruct((L, B * N, U), jnp.float32)),
        compiler_params=pltpu.CompilerParams(
            dimension_semantics=("parallel",)),
    )(S_chunk, x, h, *flat_w, Wp, bp.reshape(1, C))

    return out.reshape(B, N * C), hout.reshape(L, B, N * U)


# ----------------------------------------------------------------------------
# Plain-JAX glue: support matrix and parameter init / layout conversion
# ----------------------------------------------------------------------------
def random_walk_support(adj):
    # dense equivalent of calculate_random_walk_matrix(adj).T
    d = adj.sum(axis=1)
    d_inv = jnp.where(d > 0, 1.0 / d, 0.0)
    rw = d_inv[:, None] * adj                 # D^-1 A
    return rw.T


def xavier_normal(key, shape):
    fan_in, fan_out = shape
    std = (2.0 / (fan_in + fan_out)) ** 0.5
    return std * jax.random.normal(key, shape, dtype=jnp.float32)


def init_decoder_params(key, num_rnn_layers, rnn_units, num_classes, K):
    """Returns (kernel-layout params, raw PyTorch-layout params, Wp, bp)."""
    M = K + 1
    U = rnn_units
    kernel_layers, raw_layers = [], []
    for l in range(num_rnn_layers):
        Din = num_classes if l == 0 else U
        D = Din + U
        key, k1, k2 = jax.random.split(key, 3)
        W_ru = xavier_normal(k1, (D * M, 2 * U))       # gate gconv weight
        b_ru = jnp.full((2 * U,), 1.0, jnp.float32)    # bias_start = 1.0
        W_c = xavier_normal(k2, (D * M, U))            # candidate gconv weight
        b_c = jnp.zeros((U,), jnp.float32)             # bias_start = 0.0
        raw_layers.append((W_ru, b_ru, W_c, b_c))

        # Row-permute from the PyTorch ordering (row = d*M + m) to m-major
        # (row = m*D + d) so the kernel's lane-concatenated diffusion slab
        # multiplies with a single wide-K dot.
        def permute(W, O, D=D, M=M):
            return jnp.transpose(W.reshape(D, M, O), (1, 0, 2)).reshape(M * D, O)

        Wg = permute(W_ru, 2 * U)
        Wc = permute(W_c, U)
        kernel_layers.append((Wg, b_ru.reshape(1, 2 * U),
                              Wc, b_c.reshape(1, U)))

    key, kp1, kp2 = jax.random.split(key, 3)
    bound = 1.0 / (U ** 0.5)                  # nn.Linear-style init
    Wp = jax.random.uniform(kp1, (U, num_classes), jnp.float32, -bound, bound)
    bp = jax.random.uniform(kp2, (num_classes,), jnp.float32, -bound, bound)
    return kernel_layers, raw_layers, Wp, bp


# ----------------------------------------------------------------------------
# Pure-JAX reference mirroring the PyTorch reshape/permute semantics exactly
# ----------------------------------------------------------------------------
def _gconv_ref(inputs, state, support, W, b, N, K):
    B = inputs.shape[0]
    xcat = jnp.concatenate(
        [inputs.reshape(B, N, -1), state.reshape(B, N, -1)], axis=2)
    D = xcat.shape[2]
    x0 = jnp.transpose(xcat, (1, 2, 0)).reshape(N, D * B)
    mats = [x0]
    if K >= 1:
        x1 = support @ x0
        mats.append(x1)
        for _ in range(2, K + 1):
            x2 = 2.0 * (support @ x1) - x0
            mats.append(x2)
            x1, x0 = x2, x1
    M = len(mats)
    x = jnp.stack(mats, 0).reshape(M, N, D, B)
    x = jnp.transpose(x, (3, 1, 2, 0)).reshape(B * N, D * M)
    out = x @ W + b
    return out.reshape(B, N * W.shape[1])


def _dcgru_ref(inputs, h, support, W_ru, b_ru, W_c, b_c, N, U, K):
    value = jax.nn.sigmoid(_gconv_ref(inputs, h, support, W_ru, b_ru, N, K))
    value = value.reshape(-1, N, 2 * U)
    r = value[..., :U].reshape(-1, N * U)
    u = value[..., U:].reshape(-1, N * U)
    c = jnp.tanh(_gconv_ref(inputs, r * h, support, W_c, b_c, N, K))
    return u * h + (1.0 - u) * c


def decoder_forward_ref(inputs, hidden_state, adj, raw_layers, Wp, bp,
                        *, num_nodes, rnn_units, num_classes, K):
    support = random_walk_support(adj)
    output = inputs
    hs = []
    for l, (W_ru, b_ru, W_c, b_c) in enumerate(raw_layers):
        nh = _dcgru_ref(output, hidden_state[l], support,
                        W_ru, b_ru, W_c, b_c, num_nodes, rnn_units, K)
        hs.append(nh)
        output = nh
    proj = output.reshape(-1, rnn_units) @ Wp + bp
    return proj.reshape(-1, num_nodes * num_classes), jnp.stack(hs)


# ----------------------------------------------------------------------------
if __name__ == "__main__":
    B, N, U, C = 2, 16, 32, 4        # batch, num_nodes, rnn_units, num_classes
    K = 2                            # max_diffusion_step
    L = 2                            # num_rnn_layers

    key = jax.random.PRNGKey(0)
    key, ka, ki, kh, kp = jax.random.split(key, 5)
    adj = jax.random.uniform(ka, (N, N), jnp.float32)
    adj = adj * (adj > 0.5)          # mildly sparse adjacency
    inputs = jax.random.normal(ki, (B, N * C), jnp.float32)
    hidden = jax.random.normal(kh, (L, B, N * U), jnp.float32)

    kernel_layers, raw_layers, Wp, bp = init_decoder_params(kp, L, U, C, K)

    out, hstack = decoder_forward_pallas(
        inputs, hidden, adj, kernel_layers, Wp, bp,
        num_nodes=N, rnn_units=U, num_classes=C, K=K)
    out = jax.block_until_ready(out)
    hstack = jax.block_until_ready(hstack)

    out_ref, h_ref = decoder_forward_ref(
        inputs, hidden, adj, raw_layers, Wp, bp,
        num_nodes=N, rnn_units=U, num_classes=C, K=K)

    assert out.shape == (B, N * C)
    assert hstack.shape == (L, B, N * U)
    np.testing.assert_allclose(np.asarray(out), np.asarray(out_ref),
                               rtol=2e-3, atol=2e-3)
    np.testing.assert_allclose(np.asarray(hstack), np.asarray(h_ref),
                               rtol=2e-3, atol=2e-3)
    print("KERNEL_OK")
</pallas_src>

<mosaic_0001>
module attributes {stable_mosaic.version = 11 : i64} {
  func.func @kernel(%arg0: i32, %arg1: memref<16x16xf32, #tpu.memory_space<vmem>>, %arg2: memref<16x4xf32, #tpu.memory_space<vmem>>, %arg3: memref<2x16x32xf32, #tpu.memory_space<vmem>>, %arg4: memref<108x64xf32, #tpu.memory_space<vmem>>, %arg5: memref<1x64xf32, #tpu.memory_space<vmem>>, %arg6: memref<108x32xf32, #tpu.memory_space<vmem>>, %arg7: memref<1x32xf32, #tpu.memory_space<vmem>>, %arg8: memref<192x64xf32, #tpu.memory_space<vmem>>, %arg9: memref<1x64xf32, #tpu.memory_space<vmem>>, %arg10: memref<192x32xf32, #tpu.memory_space<vmem>>, %arg11: memref<1x32xf32, #tpu.memory_space<vmem>>, %arg12: memref<32x4xf32, #tpu.memory_space<vmem>>, %arg13: memref<1x4xf32, #tpu.memory_space<vmem>>, %arg14: memref<16x4xf32, #tpu.memory_space<vmem>>, %arg15: memref<2x16x32xf32, #tpu.memory_space<vmem>>) attributes {dimension_semantics = [#tpu.dimension_semantics<parallel>], iteration_bounds = array<i64: 2>, scalar_prefetch = 0 : i64, scratch_operands = 0 : i64, tpu.core_type = #tpu.core_type<tc>, window_params = [{pipeline_mode = #tpu.pipeline_mode<synchronous>, transform_indices = @transform_0, window_bounds = array<i64: 16, 16>}, {transform_indices = @transform_1, window_bounds = array<i64: 16, 4>}, {transform_indices = @transform_2, window_bounds = array<i64: 2, 16, 32>}, {pipeline_mode = #tpu.pipeline_mode<synchronous>, transform_indices = @transform_3, window_bounds = array<i64: 108, 64>}, {pipeline_mode = #tpu.pipeline_mode<synchronous>, transform_indices = @transform_4, window_bounds = array<i64: 1, 64>}, {pipeline_mode = #tpu.pipeline_mode<synchronous>, transform_indices = @transform_5, window_bounds = array<i64: 108, 32>}, {pipeline_mode = #tpu.pipeline_mode<synchronous>, transform_indices = @transform_6, window_bounds = array<i64: 1, 32>}, {pipeline_mode = #tpu.pipeline_mode<synchronous>, transform_indices = @transform_7, window_bounds = array<i64: 192, 64>}, {pipeline_mode = #tpu.pipeline_mode<synchronous>, transform_indices = @transform_8, window_bounds = array<i64: 1, 64>}, {pipeline_mode = #tpu.pipeline_mode<synchronous>, transform_indices = @transform_9, window_bounds = array<i64: 192, 32>}, {pipeline_mode = #tpu.pipeline_mode<synchronous>, transform_indices = @transform_10, window_bounds = array<i64: 1, 32>}, {pipeline_mode = #tpu.pipeline_mode<synchronous>, transform_indices = @transform_11, window_bounds = array<i64: 32, 4>}, {pipeline_mode = #tpu.pipeline_mode<synchronous>, transform_indices = @transform_12, window_bounds = array<i64: 1, 4>}, {transform_indices = @transform_13, window_bounds = array<i64: 16, 4>}, {transform_indices = @transform_14, window_bounds = array<i64: 2, 16, 32>}]} {
    %c0 = arith.constant 0 : index
    %c0_0 = arith.constant 0 : index
    %0 = vector.load %arg1[%c0, %c0_0] : memref<16x16xf32, #tpu.memory_space<vmem>>, vector<16x16xf32>
    %c0_1 = arith.constant 0 : index
    %c0_2 = arith.constant 0 : index
    %1 = vector.load %arg2[%c0_1, %c0_2] : memref<16x4xf32, #tpu.memory_space<vmem>>, vector<16x4xf32>
    %c0_3 = arith.constant 0 : index
    %c0_4 = arith.constant 0 : index
    %c0_5 = arith.constant 0 : index
    %2 = vector.load %arg3[%c0_3, %c0_4, %c0_5] : memref<2x16x32xf32, #tpu.memory_space<vmem>>, vector<1x16x32xf32>
    %3 = vector.shape_cast %2 : vector<1x16x32xf32> to vector<16x32xf32>
    %4 = tpu.concatenate %1, %3 in 1 : vector<16x4xf32>, vector<16x32xf32> -> vector<16x36xf32>
    %cst = arith.constant dense<0.000000e+00> : vector<16x36xf32>
    %5 = tpu.matmul %0, %4, %cst {dimension_numbers = #tpu.dot_dimension_numbers<[1], [0], [0], [1], [0, 0, 1, 1], [], []>} : vector<16x16xf32>, vector<16x36xf32>, vector<16x36xf32> -> vector<16x36xf32>
    %cst_6 = arith.constant dense<0.000000e+00> : vector<16x36xf32>
    %6 = tpu.matmul %0, %5, %cst_6 {dimension_numbers = #tpu.dot_dimension_numbers<[1], [0], [0], [1], [0, 0, 1, 1], [], []>} : vector<16x16xf32>, vector<16x36xf32>, vector<16x36xf32> -> vector<16x36xf32>
    %cst_7 = arith.constant 2.000000e+00 : f32
    %7 = vector.broadcast %cst_7 : f32 to vector<16x36xf32>
    %8 = arith.mulf %7, %6 : vector<16x36xf32>
    %9 = arith.subf %8, %4 : vector<16x36xf32>
    %10 = tpu.concatenate %4, %5, %9 in 1 : vector<16x36xf32>, vector<16x36xf32>, vector<16x36xf32> -> vector<16x108xf32>
    %c0_8 = arith.constant 0 : index
    %c0_9 = arith.constant 0 : index
    %11 = vector.load %arg4[%c0_8, %c0_9] : memref<108x64xf32, #tpu.memory_space<vmem>>, vector<108x64xf32>
    %cst_10 = arith.constant dense<0.000000e+00> : vector<16x64xf32>
    %12 = tpu.matmul %10, %11, %cst_10 {dimension_numbers = #tpu.dot_dimension_numbers<[1], [0], [0], [1], [0, 0, 1, 1], [], []>} : vector<16x108xf32>, vector<108x64xf32>, vector<16x64xf32> -> vector<16x64xf32>
    %c0_11 = arith.constant 0 : index
    %c0_12 = arith.constant 0 : index
    %13 = vector.load %arg5[%c0_11, %c0_12] : memref<1x64xf32, #tpu.memory_space<vmem>>, vector<1x64xf32>
    %14 = vector.broadcast %13 : vector<1x64xf32> to vector<16x64xf32>
    %15 = arith.addf %12, %14 : vector<16x64xf32>
    %16 = arith.negf %15 : vector<16x64xf32>
    %17 = math.exp %16 : vector<16x64xf32>
    %cst_13 = arith.constant 1.000000e+00 : f32
    %18 = vector.broadcast %cst_13 : f32 to vector<16x64xf32>
    %19 = arith.addf %18, %17 : vector<16x64xf32>
    %20 = arith.divf %18, %19 : vector<16x64xf32>
    %21 = vector.extract_strided_slice %20 {offsets = [0, 0], sizes = [16, 32], strides = [1, 1]} : vector<16x64xf32> to vector<16x32xf32>
    %22 = vector.extract_strided_slice %20 {offsets = [0, 32], sizes = [16, 32], strides = [1, 1]} : vector<16x64xf32> to vector<16x32xf32>
    %23 = arith.mulf %21, %3 : vector<16x32xf32>
    %24 = tpu.concatenate %1, %23 in 1 : vector<16x4xf32>, vector<16x32xf32> -> vector<16x36xf32>
    %cst_14 = arith.constant dense<0.000000e+00> : vector<16x36xf32>
    %25 = tpu.matmul %0, %24, %cst_14 {dimension_numbers = #tpu.dot_dimension_numbers<[1], [0], [0], [1], [0, 0, 1, 1], [], []>} : vector<16x16xf32>, vector<16x36xf32>, vector<16x36xf32> -> vector<16x36xf32>
    %cst_15 = arith.constant dense<0.000000e+00> : vector<16x36xf32>
    %26 = tpu.matmul %0, %25, %cst_15 {dimension_numbers = #tpu.dot_dimension_numbers<[1], [0], [0], [1], [0, 0, 1, 1], [], []>} : vector<16x16xf32>, vector<16x36xf32>, vector<16x36xf32> -> vector<16x36xf32>
    %cst_16 = arith.constant 2.000000e+00 : f32
    %27 = vector.broadcast %cst_16 : f32 to vector<16x36xf32>
    %28 = arith.mulf %27, %26 : vector<16x36xf32>
    %29 = arith.subf %28, %24 : vector<16x36xf32>
    %30 = tpu.concatenate %24, %25, %29 in 1 : vector<16x36xf32>, vector<16x36xf32>, vector<16x36xf32> -> vector<16x108xf32>
    %c0_17 = arith.constant 0 : index
    %c0_18 = arith.constant 0 : index
    %31 = vector.load %arg6[%c0_17, %c0_18] : memref<108x32xf32, #tpu.memory_space<vmem>>, vector<108x32xf32>
    %cst_19 = arith.constant dense<0.000000e+00> : vector<16x32xf32>
    %32 = tpu.matmul %30, %31, %cst_19 {dimension_numbers = #tpu.dot_dimension_numbers<[1], [0], [0], [1], [0, 0, 1, 1], [], []>} : vector<16x108xf32>, vector<108x32xf32>, vector<16x32xf32> -> vector<16x32xf32>
    %c0_20 = arith.constant 0 : index
    %c0_21 = arith.constant 0 : index
    %33 = vector.load %arg7[%c0_20, %c0_21] : memref<1x32xf32, #tpu.memory_space<vmem>>, vector<1x32xf32>
    %34 = vector.broadcast %33 : vector<1x32xf32> to vector<16x32xf32>
    %35 = arith.addf %32, %34 : vector<16x32xf32>
    %36 = math.tanh %35 : vector<16x32xf32>
    %37 = arith.mulf %22, %3 : vector<16x32xf32>
    %cst_22 = arith.constant 1.000000e+00 : f32
    %38 = vector.broadcast %cst_22 : f32 to vector<16x32xf32>
    %39 = arith.subf %38, %22 : vector<16x32xf32>
    %40 = arith.mulf %39, %36 : vector<16x32xf32>
    %41 = arith.addf %37, %40 : vector<16x32xf32>
    %c0_23 = arith.constant 0 : index
    %c0_24 = arith.constant 0 : index
    %c0_25 = arith.constant 0 : index
    %42 = vector.load %arg15[%c0_23, %c0_24, %c0_25] : memref<2x16x32xf32, #tpu.memory_space<vmem>>, vector<1x16x32xf32>
    %43 = vector.shape_cast %42 : vector<1x16x32xf32> to vector<16x32xf32>
    %44 = vector.shape_cast %41 : vector<16x32xf32> to vector<1x16x32xf32>
    tpu.vector_store %arg15[%c0_23, %c0_24, %c0_25], %44 {strides = array<i32>} : memref<2x16x32xf32, #tpu.memory_space<vmem>>, vector<1x16x32xf32>,
    %c1 = arith.constant 1 : index
    %c0_26 = arith.constant 0 : index
    %c0_27 = arith.constant 0 : index
    %45 = vector.load %arg3[%c1, %c0_26, %c0_27] : memref<2x16x32xf32, #tpu.memory_space<vmem>>, vector<1x16x32xf32>
    %46 = vector.shape_cast %45 : vector<1x16x32xf32> to vector<16x32xf32>
    %47 = tpu.concatenate %41, %46 in 1 : vector<16x32xf32>, vector<16x32xf32> -> vector<16x64xf32>
    %cst_28 = arith.constant dense<0.000000e+00> : vector<16x64xf32>
    %48 = tpu.matmul %0, %47, %cst_28 {dimension_numbers = #tpu.dot_dimension_numbers<[1], [0], [0], [1], [0, 0, 1, 1], [], []>} : vector<16x16xf32>, vector<16x64xf32>, vector<16x64xf32> -> vector<16x64xf32>
    %cst_29 = arith.constant dense<0.000000e+00> : vector<16x64xf32>
    %49 = tpu.matmul %0, %48, %cst_29 {dimension_numbers = #tpu.dot_dimension_numbers<[1], [0], [0], [1], [0, 0, 1, 1], [], []>} : vector<16x16xf32>, vector<16x64xf32>, vector<16x64xf32> -> vector<16x64xf32>
    %cst_30 = arith.constant 2.000000e+00 : f32
    %50 = vector.broadcast %cst_30 : f32 to vector<16x64xf32>
    %51 = arith.mulf %50, %49 : vector<16x64xf32>
    %52 = arith.subf %51, %47 : vector<16x64xf32>
    %53 = tpu.concatenate %47, %48, %52 in 1 : vector<16x64xf32>, vector<16x64xf32>, vector<16x64xf32> -> vector<16x192xf32>
    %c0_31 = arith.constant 0 : index
    %c0_32 = arith.constant 0 : index
    %54 = vector.load %arg8[%c0_31, %c0_32] : memref<192x64xf32, #tpu.memory_space<vmem>>, vector<192x64xf32>
    %cst_33 = arith.constant dense<0.000000e+00> : vector<16x64xf32>
    %55 = tpu.matmul %53, %54, %cst_33 {dimension_numbers = #tpu.dot_dimension_numbers<[1], [0], [0], [1], [0, 0, 1, 1], [], []>} : vector<16x192xf32>, vector<192x64xf32>, vector<16x64xf32> -> vector<16x64xf32>
    %c0_34 = arith.constant 0 : index
    %c0_35 = arith.constant 0 : index
    %56 = vector.load %arg9[%c0_34, %c0_35] : memref<1x64xf32, #tpu.memory_space<vmem>>, vector<1x64xf32>
    %57 = vector.broadcast %56 : vector<1x64xf32> to vector<16x64xf32>
    %58 = arith.addf %55, %57 : vector<16x64xf32>
    %59 = arith.negf %58 : vector<16x64xf32>
    %60 = math.exp %59 : vector<16x64xf32>
    %cst_36 = arith.constant 1.000000e+00 : f32
    %61 = vector.broadcast %cst_36 : f32 to vector<16x64xf32>
    %62 = arith.addf %61, %60 : vector<16x64xf32>
    %63 = arith.divf %61, %62 : vector<16x64xf32>
    %64 = vector.extract_strided_slice %63 {offsets = [0, 0], sizes = [16, 32], strides = [1, 1]} : vector<16x64xf32> to vector<16x32xf32>
    %65 = vector.extract_strided_slice %63 {offsets = [0, 32], sizes = [16, 32], strides = [1, 1]} : vector<16x64xf32> to vector<16x32xf32>
    %66 = arith.mulf %64, %46 : vector<16x32xf32>
    %67 = tpu.concatenate %41, %66 in 1 : vector<16x32xf32>, vector<16x32xf32> -> vector<16x64xf32>
    %cst_37 = arith.constant dense<0.000000e+00> : vector<16x64xf32>
    %68 = tpu.matmul %0, %67, %cst_37 {dimension_numbers = #tpu.dot_dimension_numbers<[1], [0], [0], [1], [0, 0, 1, 1], [], []>} : vector<16x16xf32>, vector<16x64xf32>, vector<16x64xf32> -> vector<16x64xf32>
    %cst_38 = arith.constant dense<0.000000e+00> : vector<16x64xf32>
    %69 = tpu.matmul %0, %68, %cst_38 {dimension_numbers = #tpu.dot_dimension_numbers<[1], [0], [0], [1], [0, 0, 1, 1], [], []>} : vector<16x16xf32>, vector<16x64xf32>, vector<16x64xf32> -> vector<16x64xf32>
    %cst_39 = arith.constant 2.000000e+00 : f32
    %70 = vector.broadcast %cst_39 : f32 to vector<16x64xf32>
    %71 = arith.mulf %70, %69 : vector<16x64xf32>
    %72 = arith.subf %71, %67 : vector<16x64xf32>
    %73 = tpu.concatenate %67, %68, %72 in 1 : vector<16x64xf32>, vector<16x64xf32>, vector<16x64xf32> -> vector<16x192xf32>
    %c0_40 = arith.constant 0 : index
    %c0_41 = arith.constant 0 : index
    %74 = vector.load %arg10[%c0_40, %c0_41] : memref<192x32xf32, #tpu.memory_space<vmem>>, vector<192x32xf32>
    %cst_42 = arith.constant dense<0.000000e+00> : vector<16x32xf32>
    %75 = tpu.matmul %73, %74, %cst_42 {dimension_numbers = #tpu.dot_dimension_numbers<[1], [0], [0], [1], [0, 0, 1, 1], [], []>} : vector<16x192xf32>, vector<192x32xf32>, vector<16x32xf32> -> vector<16x32xf32>
    %c0_43 = arith.constant 0 : index
    %c0_44 = arith.constant 0 : index
    %76 = vector.load %arg11[%c0_43, %c0_44] : memref<1x32xf32, #tpu.memory_space<vmem>>, vector<1x32xf32>
    %77 = vector.broadcast %76 : vector<1x32xf32> to vector<16x32xf32>
    %78 = arith.addf %75, %77 : vector<16x32xf32>
    %79 = math.tanh %78 : vector<16x32xf32>
    %80 = arith.mulf %65, %46 : vector<16x32xf32>
    %cst_45 = arith.constant 1.000000e+00 : f32
    %81 = vector.broadcast %cst_45 : f32 to vector<16x32xf32>
    %82 = arith.subf %81, %65 : vector<16x32xf32>
    %83 = arith.mulf %82, %79 : vector<16x32xf32>
    %84 = arith.addf %80, %83 : vector<16x32xf32>
    %c1_46 = arith.constant 1 : index
    %c0_47 = arith.constant 0 : index
    %c0_48 = arith.constant 0 : index
    %85 = vector.load %arg15[%c1_46, %c0_47, %c0_48] : memref<2x16x32xf32, #tpu.memory_space<vmem>>, vector<1x16x32xf32>
    %86 = vector.shape_cast %85 : vector<1x16x32xf32> to vector<16x32xf32>
    %87 = vector.shape_cast %84 : vector<16x32xf32> to vector<1x16x32xf32>
    tpu.vector_store %arg15[%c1_46, %c0_47, %c0_48], %87 {strides = array<i32>} : memref<2x16x32xf32, #tpu.memory_space<vmem>>, vector<1x16x32xf32>,
    %c0_49 = arith.constant 0 : index
    %c0_50 = arith.constant 0 : index
    %88 = vector.load %arg12[%c0_49, %c0_50] : memref<32x4xf32, #tpu.memory_space<vmem>>, vector<32x4xf32>
    %cst_51 = arith.constant dense<0.000000e+00> : vector<16x4xf32>
    %89 = tpu.matmul %84, %88, %cst_51 {dimension_numbers = #tpu.dot_dimension_numbers<[1], [0], [0], [1], [0, 0, 1, 1], [], []>} : vector<16x32xf32>, vector<32x4xf32>, vector<16x4xf32> -> vector<16x4xf32>
    %c0_52 = arith.constant 0 : index
    %c0_53 = arith.constant 0 : index
    %90 = vector.load %arg13[%c0_52, %c0_53] : memref<1x4xf32, #tpu.memory_space<vmem>>, vector<1x4xf32>
    %91 = vector.broadcast %90 : vector<1x4xf32> to vector<16x4xf32>
    %92 = arith.addf %89, %91 : vector<16x4xf32>
    %c0_54 = arith.constant 0 : index
    %c0_55 = arith.constant 0 : index
    %93 = vector.load %arg14[%c0_54, %c0_55] : memref<16x4xf32, #tpu.memory_space<vmem>>, vector<16x4xf32>
    tpu.vector_store %arg14[%c0_54, %c0_55], %92 {strides = array<i32>} : memref<16x4xf32, #tpu.memory_space<vmem>>, vector<16x4xf32>,
    return
  }
  func.func @transform_0(%arg0: i32) -> (i32, i32) {
    %c0_i32 = arith.constant 0 : i32
    %c0_i32_0 = arith.constant 0 : i32
    %c0_i32_1 = arith.constant 0 : i32
    return %c0_i32, %c0_i32_0 : i32, i32
  }
  func.func @transform_1(%arg0: i32) -> (i32, i32) {
    %c0_i32 = arith.constant 0 : i32
    %c0_i32_0 = arith.constant 0 : i32
    return %arg0, %c0_i32 : i32, i32
  }
  func.func @transform_2(%arg0: i32) -> (i32, i32, i32) {
    %c0_i32 = arith.constant 0 : i32
    %c0_i32_0 = arith.constant 0 : i32
    %c0_i32_1 = arith.constant 0 : i32
    return %c0_i32, %arg0, %c0_i32_0 : i32, i32, i32
  }
  func.func @transform_3(%arg0: i32) -> (i32, i32) {
    %c0_i32 = arith.constant 0 : i32
    %c0_i32_0 = arith.constant 0 : i32
    %c0_i32_1 = arith.constant 0 : i32
    return %c0_i32, %c0_i32_0 : i32, i32
  }
  func.func @transform_4(%arg0: i32) -> (i32, i32) {
    %c0_i32 = arith.constant 0 : i32
    %c0_i32_0 = arith.constant 0 : i32
    %c0_i32_1 = arith.constant 0 : i32
    return %c0_i32, %c0_i32_0 : i32, i32
  }
  func.func @transform_5(%arg0: i32) -> (i32, i32) {
    %c0_i32 = arith.constant 0 : i32
    %c0_i32_0 = arith.constant 0 : i32
    %c0_i32_1 = arith.constant 0 : i32
    return %c0_i32, %c0_i32_0 : i32, i32
  }
  func.func @transform_6(%arg0: i32) -> (i32, i32) {
    %c0_i32 = arith.constant 0 : i32
    %c0_i32_0 = arith.constant 0 : i32
    %c0_i32_1 = arith.constant 0 : i32
    return %c0_i32, %c0_i32_0 : i32, i32
  }
  func.func @transform_7(%arg0: i32) -> (i32, i32) {
    %c0_i32 = arith.constant 0 : i32
    %c0_i32_0 = arith.constant 0 : i32
    %c0_i32_1 = arith.constant 0 : i32
    return %c0_i32, %c0_i32_0 : i32, i32
  }
  func.func @transform_8(%arg0: i32) -> (i32, i32) {
    %c0_i32 = arith.constant 0 : i32
    %c0_i32_0 = arith.constant 0 : i32
    %c0_i32_1 = arith.constant 0 : i32
    return %c0_i32, %c0_i32_0 : i32, i32
  }
  func.func @transform_9(%arg0: i32) -> (i32, i32) {
    %c0_i32 = arith.constant 0 : i32
    %c0_i32_0 = arith.constant 0 : i32
    %c0_i32_1 = arith.constant 0 : i32
    return %c0_i32, %c0_i32_0 : i32, i32
  }
  func.func @transform_10(%arg0: i32) -> (i32, i32) {
    %c0_i32 = arith.constant 0 : i32
    %c0_i32_0 = arith.constant 0 : i32
    %c0_i32_1 = arith.constant 0 : i32
    return %c0_i32, %c0_i32_0 : i32, i32
  }
  func.func @transform_11(%arg0: i32) -> (i32, i32) {
    %c0_i32 = arith.constant 0 : i32
    %c0_i32_0 = arith.constant 0 : i32
    %c0_i32_1 = arith.constant 0 : i32
    return %c0_i32, %c0_i32_0 : i32, i32
  }
  func.func @transform_12(%arg0: i32) -> (i32, i32) {
    %c0_i32 = arith.constant 0 : i32
    %c0_i32_0 = arith.constant 0 : i32
    %c0_i32_1 = arith.constant 0 : i32
    return %c0_i32, %c0_i32_0 : i32, i32
  }
  func.func @transform_13(%arg0: i32) -> (i32, i32) {
    %c0_i32 = arith.constant 0 : i32
    %c0_i32_0 = arith.constant 0 : i32
    return %arg0, %c0_i32 : i32, i32
  }
  func.func @transform_14(%arg0: i32) -> (i32, i32, i32) {
    %c0_i32 = arith.constant 0 : i32
    %c0_i32_0 = arith.constant 0 : i32
    %c0_i32_1 = arith.constant 0 : i32
    return %c0_i32, %arg0, %c0_i32_0 : i32, i32, i32
  }
}

</mosaic_0001>

<bundles_post_ra>
// kernel: tpu_custom_call.1
= control target key start
LH: loop header
LB: loop body
LE: loop exit
PB: predicated region body
PF: predicated region fallthrough
CT: control target
= control target key end

     0   :  { %s3183_s0 = inlined_call_operand.vmem [shape: f32[16,16], index: 0, kind: input, shape index: {}]   ;;  %s3184_s1 = inlined_call_operand.vmem [shape: f32[32,4], index: 1, kind: input, shape index: {}]   ;;  %s3185_s2 = inlined_call_operand.vmem [shape: f32[2,32,32], index: 2, kind: input, shape index: {}]   ;;  %s3186_s3 = inlined_call_operand.vmem [shape: f32[108,64], index: 3, kind: input, shape index: {}]   ;;  %s3187_s4 = inlined_call_operand.vmem [shape: f32[1,64], index: 4, kind: input, shape index: {}]   ;;  %s3188_s5 = inlined_call_operand.vmem [shape: f32[108,32], index: 5, kind: input, shape index: {}]   ;;  %s3189_s6 = inlined_call_operand.vmem [shape: f32[1,32], index: 6, kind: input, shape index: {}]   ;;  %s3190_s7 = inlined_call_operand.vmem [shape: f32[192,64], index: 7, kind: input, shape index: {}]   ;;  %s3191_s8 = inlined_call_operand.vmem [shape: f32[1,64], index: 8, kind: input, shape index: {}]   ;;  %s3192_s9 = inlined_call_operand.vmem [shape: f32[192,32], index: 9, kind: input, shape index: {}]   ;;  %s3193_s10 = inlined_call_operand.vmem [shape: f32[1,32], index: 10, kind: input, shape index: {}]   ;;  %s3194_s11 = inlined_call_operand.vmem [shape: f32[32,4], index: 11, kind: input, shape index: {}]   ;;  %s3195_s12 = inlined_call_operand.vmem [shape: f32[1,4], index: 12, kind: input, shape index: {}]   ;;  %s3196_s13 = inlined_call_operand.vmem [shape: f32[32,4], index: 13, kind: output, shape index: {0}]   ;;  %s3197_s14 = inlined_call_operand.hbm [shape: f32[2,32,32], index: 14, kind: output, shape index: {1}]  }
   0x1   :  { %3210 = sst [smem:[#allocation9_spill]] %s3183_s0 }
   0x2   :  { %3211 = sst [smem:[#allocation10_spill]] %s3184_s1 }
   0x3   :  { %3212 = sst [smem:[#allocation11_spill]] %s3185_s2 }
   0x4   :  { %20 = vsyncpa [#allocation4], 0 }
   0x5   :  { %22 = vsyncpa [#allocation4 + $0x1], 0  ;;  %s2527_s29 = smov 0   ;;  %s2529_s30 = smov 0  }
   0x6   :  { %s2531_s15 = smov 0   ;;  %s2533_s16 = smov 0  }
   0x7 LB: > { %s2548_s17 = sadd.s32 4294967295, %s2436_s16   ;;  %s2059_s18 = sadd.s32 4294967294, %s2436_s16   ;;  %s2436_s16 = sphi %s2533_s16, %s3230_s16   ;;  %s2432_s15 = sphi %s2531_s15, %s3229_s15   ;;  %s2428_s30 = sphi %s2529_s30, %s3228_s30   ;;  %s2424_s29 = sphi %s2527_s29, %s3227_s29  }
   0x8   : > { %s2552_s19 = sadd.s32 1, %s2436_s16   ;;  %s82_s20 = sadd.s32 1, %s2432_s15 }
   0x9   : > { %s79_s21 = ssub.s32 %s2436_s16, %s2552_s19  ;;  %p89_p0 = scmp.ne.s32.totalorder %s2432_s15, %s2428_s30 }
   0xa   : > { %p80_p1 = scmp.eq.s32.totalorder %s79_s21, 0  ;;  %p90_p2 = scmp.eq.s32.totalorder %s2436_s16, 0 }
   0xb   : > { %p355_p3 = scmp.eq.s32.totalorder %s2548_s17, 1  ;;  %p360_p4 = scmp.ne.s32.totalorder %s2428_s30, %s2424_s29 }
   0xc   : > { %s2564_s22 = scalar_select %p80_p1, %s2432_s15, %s82_s20  }
   0xd   : > { %p91_p5 = por %p90_p2, %p89_p0  ;;  %p2566_p6 = por %p355_p3, %p89_p0 }
   0xe   : > { %3213 = sst [smem:[#allocation8_spill]] %s2564_s22  ;;  %p361_p7 = scmp.eq.s32.totalorder %s2059_s18, 1 }
   0xf   : > { %p2061_p9 = scmp.ge.s32.totalorder %s2436_s16, 2 }
  0x10   : > { %p2570_p8 = por %p361_p7, %p360_p4 }
  0x11   : > { %410 = sbr.rel (%p2061_p9) target bundleno = 34 (0x22), region = 60 }
  0x16   : > { %422 = sbr.rel (!%p91_p5) target bundleno = 34 (0x22), region = 68  ;;  %s424_s25 = sand.u32 (%p91_p5), 1, %s2432_s15  }
  0x17   : > { %s2118_s26 = sshll.u32 (%p91_p5), %s2436_s16, 4  ;;  %s2062_s27 = sshll.u32 (%p91_p5), %s424_s25, 5 }
  0x18   : > { %s3216_s2 = sld [smem:[#allocation11_spill]] (%p91_p5)  ;;  %s426_s18 = scalar_lea.vmem (%p91_p5), [#allocation2], %s2062_s27 }
  0x1e   : > { %s429_s21 = scalar_lea.vmem %s3216_s2, %s2118_s26 }
  0x1f   : > { %v464_v0 = vld [vmem:[%s429_s21] sm:$0xff]  ;;  %v466_v1 = vld [vmem:[%s429_s21 + $0x8] sm:$0xff] }
  0x20   : > { %v468_v2 = vld [vmem:[%s429_s21 + $0x20] sm:$0xff]  ;;  %465 = vst [vmem:[%s426_s18] sm:$0xff] %v464_v0  ;;  %467 = vst [vmem:[%s426_s18 + $0x8] sm:$0xff] %v466_v1  ;;  %v470_v3 = vld [vmem:[%s429_s21 + $0x28] sm:$0xff] }
  0x21   : > { %469 = vst [vmem:[%s426_s18 + $0x10] sm:$0xff] %v468_v2  ;;  %471 = vst [vmem:[%s426_s18 + $0x18] sm:$0xff] %v470_v3 }
  0x22 PF: > { %p2065_p10 = scmp.ge.s32.totalorder %s2436_s16, 1  ;;  %p476_p11 = scmp.lt.s32.totalorder %s2436_s16, 3 }
  0x24   : > { %p477_p12 = pnand %p2065_p10, %p476_p11 }
  0x25   : > { %s3198_s25 = sand.u32 (!%p477_p12), 1, %s2428_s30   ;;  %s3217_s0 = sld [smem:[#allocation9_spill]] (!%p477_p12) }
  0x26   : > { %480 = sbr.rel (%p477_p12) target bundleno = 3793 (0xed1), region = 106  ;;  %s2592_s27 = sshll.u32 (!%p477_p12), %s3198_s25, 5 }
  0x27   : > { %s2599_s20 = scalar_lea.vmem (!%p477_p12), [#allocation2], %s2592_s27  ;;  %s3200_s21 = smov (!%p477_p12), 4  }
  0x28   : > { %s2068_s18 = sshll.u32 (!%p477_p12), %s2548_s17, 1  ;;  %s3218_s1 = sld [smem:[#allocation10_spill]] (!%p477_p12) }
  0x29   : > { %p539_p13 = scmp.lt.s32.totalorder (!%p477_p12), %s2068_s18, 3  ;;  %s3219_s22 = smov (!%p477_p12), 4  }
  0x2a   : > { %s3220_s25 = smov (!%p477_p12), 36   ;;  %s2828_s28 = scalar_lea.vmem (!%p477_p12), [#allocation3], %s2592_s27 }
  0x2b   : > { %v2588_v4 = vld [vmem:[%s3217_s0] sm:$0xff]  ;;  %vm569_vm0 = vcmask 130048   ;;  %v2602_v5 = vld [vmem:[%s2599_s20 + $0x8] sm:$0xff]  ;;  %s3232_s18 = smov (!%p539_p13, %s2068_s18), 3  ;;  %vm566_vm1 = vcmask 31744   ;;  %vm780_vm2 = vcmask 1043456  }
  0x2c   : > { %2194 = vmatprep.mubr.msk.f32.mxu0 %vm569_vm0, %v2588_v4  ;;  %2201 = vmatprep.mubr.msk.f32.mxu1 %vm569_vm0, %v2588_v4  ;;  %v2607_v6 = vld [vmem:[%s2599_s20] sm:$0xff]  ;;  %s3199_s26 = sshll.u32 %s3232_s18, 3  ;;  %v2637_v13 = vld [vmem:[%s3217_s0 + $0x8] sm:$0xff]  ;;  %v763_v18 = vld [vmem:[%s3186_s3 + $0x58] sm:$0xff]  ;;  %s3204_s0 = smov 72   ;;  %vm746_vm3 = vcmask 293888  }
  0x2d   : > { %562 = vrot.lane.b32.xlu0 %v2602_v5, %s3200_s21  ;;  %v765_v16 = vld [vmem:[%s3186_s3 + $0x68] sm:$0xf]  ;;  %v764_v17 = vld [vmem:[%s3186_s3 + $0x60] sm:$0xff]  ;;  %v762_v19 = vld [vmem:[%s3186_s3 + $0x50] sm:$0xff]  ;;  %vm749_vm4 = vcmask 588800   ;;  %vm773_vm5 = vcmask 883712  }
  0x2e   : > { %s542_s2 = scalar_lea.vmem %s3218_s1, %s3199_s26  ;;  %v761_v20 = vld [vmem:[%s3186_s3 + $0x48] sm:$0xff]  ;;  %v760_v21 = vld [vmem:[%s3186_s3 + $0x40] sm:$0xff]  ;;  %v759_v22 = vld [vmem:[%s3186_s3 + $0x38] sm:$0xff]  ;;  %s3221_s1 = smov 72   ;;  %vm1194_vm6 = vcmask 261120   ;;  %vm1372_vm7 = vcmask 523264  }
  0x2f   : > { %v2620_v7 = vld [vmem:[%s542_s2 + $0x8] sm:$0xff]  ;;  %v2627_v10 = vld [vmem:[%s542_s2] sm:$0xff]  ;;  %s3202_s2 = smov 36   ;;  %v758_v23 = vld [vmem:[%s3186_s3 + $0x30] sm:$0xff]  ;;  %s3208_s27 = smov 64  }
  0x30   : > { %v757_v24 = vld [vmem:[%s3186_s3 + $0x28] sm:$0xff]  ;;  %v756_v25 = vld [vmem:[%s3186_s3 + $0x20] sm:$0xff]  ;;  %v755_v26 = vld [vmem:[%s3186_s3 + $0x18] sm:$0xff]  ;;  %s3225_s26 = sand.u32 1, %s2428_s30  }
  0x31   : > { %560 = vrot.lane.b32.xlu0 %v2607_v6, %s3200_s21  ;;  %v754_v27 = vld [vmem:[%s3186_s3 + $0x10] sm:$0xff]  ;;  %v753_v28 = vld [vmem:[%s3186_s3 + $0x8] sm:$0xff]  ;;  %v752_v29 = vld [vmem:[%s3186_s3] sm:$0xff]  ;;  %s3222_s21 = smov 64  }
  0x32   : > { %v2076_v44 = vld [vmem:[%s3187_s4] ss:$0 sm:$0xff]  ;;  %v1070_v1 = vld [vmem:[%s3188_s5 + $0x68] sm:$0xf]  ;;  %v1068_v3 = vld [vmem:[%s3188_s5 + $0x58] sm:$0xff] }
  0x33   : > { %v1069_v2 = vld [vmem:[%s3188_s5 + $0x60] sm:$0xff] }
  0x9f   : > { %v563_v8 = vpop.permute.xlu0 %562 }
  0xa0   : > { %v2624_v9 = vsel %vm566_vm1, %v2620_v7, %v563_v8  ;;  %v1066_v8 = vld [vmem:[%s3188_s5 + $0x48] sm:$0xff] }
  0xa1   : > { %2190 = vmatprep.subr.mxu0 %v2624_v9 }
  0xa2   : > { %2191 = vmatpush3.msra.mxu0 %v2624_v9 }
  0xa3   : > { %v561_v11 = vpop.permute.xlu0 %560 }
  0xa4   : > { %v2632_v12 = vsel %vm566_vm1, %v2627_v10, %v561_v11  ;;  %v1063_v11 = vld [vmem:[%s3188_s5 + $0x30] sm:$0xff] }
  0xa5   : > { %2192 = vmatprep.subr.mxu0 %v2632_v12 }
  0xa6   : > { %2193 = vmatpush3.msra.mxu0 %v2632_v12 }
  0xa7   : > { %2195 = vmatmul.mubr.msk.f32.vlgmr.msra.gmra.mxu0 %vm569_vm0, %v2637_v13  ;;  %2204 = vmatprep.subr.msk.mxu0 %vm780_vm2, %v765_v16 }
  0xa8   : > { %2205 = vmatpush3.msk.msra.mxu0 %vm780_vm2, %v765_v16  ;;  %v1059_v16 = vld [vmem:[%s3188_s5 + $0x10] sm:$0xff] }
  0xa9   : > { %2206 = vmatprep.subr.mxu0 %v764_v17 }
  0xaa   : > { %2207 = vmatpush3.msra.mxu0 %v764_v17  ;;  %v1058_v17 = vld [vmem:[%s3188_s5 + $0x8] sm:$0xff] }
  0xab   : > { %2208 = vmatprep.subr.mxu0 %v763_v18 }
  0xac   : > { %2209 = vmatpush3.msra.mxu0 %v763_v18  ;;  %v1057_v18 = vld [vmem:[%s3188_s5] sm:$0xff] }
  0xad   : > { %2210 = vmatprep.subr.mxu0 %v762_v19 }
  0xae   : > { %2211 = vmatpush3.msra.mxu0 %v762_v19 }
  0xaf   : > { %2212 = vmatprep.subr.mxu0 %v761_v20 }
  0xb0   : > { %2213 = vmatpush3.msra.mxu0 %v761_v20 }
  0xb1   : > { %2214 = vmatprep.subr.mxu0 %v760_v21 }
  0xb2   : > { %2215 = vmatpush3.msra.mxu0 %v760_v21 }
  0xb3   : > { %2216 = vmatprep.subr.mxu0 %v759_v22 }
  0xb4   : > { %2217 = vmatpush3.msra.mxu0 %v759_v22 }
  0xb5   : > { %2218 = vmatprep.subr.mxu0 %v758_v23 }
  0xb6   : > { %2219 = vmatpush3.msra.mxu0 %v758_v23 }
  0xb7   : > { %2220 = vmatprep.subr.mxu0 %v757_v24 }
  0xb8   : > { %2221 = vmatpush3.msra.mxu0 %v757_v24 }
  0xb9   : > { %2222 = vmatprep.subr.mxu0 %v756_v25 }
  0xba   : > { %2223 = vmatpush3.msra.mxu0 %v756_v25 }
  0xbb   : > { %2224 = vmatprep.subr.mxu0 %v755_v26 }
  0xbc   : > { %2225 = vmatpush3.msra.mxu0 %v755_v26 }
  0xbd   : > { %2226 = vmatprep.subr.mxu0 %v754_v27 }
  0xbe   : > { %2227 = vmatpush3.msra.mxu0 %v754_v27 }
  0xbf   : > { %2228 = vmatprep.subr.mxu0 %v753_v28 }
  0xc0   : > { %2229 = vmatpush3.msra.mxu0 %v753_v28 }
  0xc1   : > { %2230 = vmatprep.subr.mxu0 %v752_v29 }
  0xc2   : > { %2231 = vmatpush3.msra.mxu0 %v752_v29 }
 0x167   : > { %v2196_v14 = vpop.f32.mrf.mxu0 }
 0x168   : > { %734 = vrot.lane.b32.xlu1 %v2196_v14, %s3202_s2  ;;  %2197 = vmatprep.subr.mxu1 %v2196_v14 }
 0x169   : > { %v642_v15 = vpop.f32.mrf.mxu0  ;;  %2198 = vmatpush3.msra.mxu1 %v2196_v14  ;;  %v1061_v14 = vld [vmem:[%s3188_s5 + $0x20] sm:$0xff] }
 0x16a   : > { %2199 = vmatprep.subr.mxu1 %v642_v15 }
 0x16b   : > { %2200 = vmatpush3.msra.mxu1 %v642_v15 }
 0x16c   : > { %732 = vrot.lane.b32.xlu1 %v642_v15, %s3202_s2  ;;  %2202 = vmatmul.mubr.msk.f32.vlgmr.msra.gmra.mxu1 %vm569_vm0, %v2637_v13  ;;  %v1060_v15 = vld [vmem:[%s3188_s5 + $0x18] sm:$0xff] }
 0x16d   : > { %2239 = vmatprep.mubr.msk.f32.mxu1 %vm569_vm0, %v2588_v4 }
 0x1da   : > { %v735_v36 = vpop.permute.xlu1 %734 }
 0x1db   : > { %v748_v41 = vsel %vm746_vm3, %v2624_v9, %v735_v36 }
 0x1de   : > { %v733_v37 = vpop.permute.xlu1 %732 }
 0x1df   : > { %v747_v39 = vsel %vm746_vm3, %v2632_v12, %v733_v37 }
 0x22c   : > { %v2203_v30 = vpop.f32.mrf.mxu1 }
 0x22d   : > { %v727_v31 = vmul.f32 2.0, %v2203_v30 }
 0x22e   : > { %v717_v32 = vpop.f32.mrf.mxu1 }
 0x22f   : > { %v729_v33 = vsub.f32 %v727_v31, %v2624_v9  ;;  %v726_v34 = vmul.f32 2.0, %v717_v32  ;;  %v1065_v9 = vld [vmem:[%s3188_s5 + $0x40] sm:$0xff] }
 0x231   : > { %v728_v35 = vsub.f32 %v726_v34, %v2632_v12  ;;  %742 = vrot.lane.b32.xlu1 %v729_v33, %s3204_s0  ;;  %v1062_v12 = vld [vmem:[%s3188_s5 + $0x28] sm:$0xff] }
 0x233   : > { %740 = vrot.lane.b32.xlu0 %v728_v35, %s3204_s0  ;;  %s3224_s0 = sshll.u32 %s3232_s18, 3 }
 0x2a3   : > { %v743_v38 = vpop.permute.xlu1 %742 }
 0x2a4   : > { %v751_v43 = vsel %vm749_vm4, %v748_v41, %v743_v38  ;;  %v2808_v38 = vld [vmem:[%s2599_s20 + $0x18] sm:$0xff] }
 0x2a5   : > { %v741_v40 = vpop.permute.xlu0 %740 }
 0x2a6   : > { %v750_v42 = vsel %vm749_vm4, %v747_v39, %v741_v40  ;;  %v2813_v39 = vld [vmem:[%s2599_s20 + $0x10] sm:$0xff]  ;;  %s3206_s20 = smov 96  }
 0x2a7   : > { %2232 = vmatprep.mubr.msk.f32.mxu0 %vm773_vm5, %v750_v42 }
 0x2a8   : > { %2233 = vmatmul.mubr.msk.f32.vlgmr.msra.gmra.mxu0 %vm773_vm5, %v751_v43 }
 0x2a9   : > { %2284 = vmatprep.mubr.msk.f32.mxu0 %vm569_vm0, %v2588_v4 }
 0x368   : > { %v2234_v45 = vpop.f32.mrf.mxu0 }
 0x369   : > { %v856_v46 = vadd.f32 %v2234_v45, %v2076_v44 }
 0x36a   : > { %v850_v47 = vpop.f32.mrf.mxu0 }
 0x36b   : > { %v2081_v48 = vmul.f32 -1.442695, %v856_v46  ;;  %v851_v49 = vadd.f32 %v2076_v44, %v850_v47 }
 0x36d   : > { %2378 = vpow2.f32 %v2081_v48  ;;  %v2080_v50 = vmul.f32 -1.442695, %v851_v49 }
 0x36f   : > { %2380 = vpow2.f32 %v2080_v50 }
 0x37a   : > { %v2379_v51 = vpop.eup %2378 }
 0x37b   : > { %v866_v52 = vadd.f32 1.0, %v2379_v51 }
 0x37c   : > { %v2381_v53 = vpop.eup %2380 }
 0x37d   : > { %2382 = vrcp.f32 %v866_v52  ;;  %v865_v54 = vadd.f32 1.0, %v2381_v53 }
 0x37f   : > { %2384 = vrcp.f32 %v865_v54 }
 0x38a   : > { %v2710_v55 = vpop.eup %2382 }
 0x38b   : > { %v872_v56 = vmul.f32 %v2710_v55, %v2602_v5  ;;  %v1173_v41 = vsub.f32 1.0, %v2710_v55 }
 0x38c   : > { %v2714_v57 = vpop.eup %2384 }
 0x38d   : > { %877 = vrot.lane.b32.xlu0 %v872_v56, %s3219_s22  ;;  %v871_v58 = vmul.f32 %v2714_v57, %v2607_v6  ;;  %v1172_v47 = vsub.f32 1.0, %v2714_v57 }
 0x38f   : > { %875 = vrot.lane.b32.xlu1 %v871_v58, %s3219_s22  ;;  %s2441_s22 = smov 32  }
 0x3ff   : > { %v878_v59 = vpop.permute.xlu0 %877 }
 0x400   : > { %v2722_v60 = vsel %vm566_vm1, %v2620_v7, %v878_v59  ;;  %v1067_v7 = vld [vmem:[%s3188_s5 + $0x50] sm:$0xff] }
 0x401   : > { %2235 = vmatprep.subr.mxu1 %v2722_v60  ;;  %v876_v61 = vpop.permute.xlu1 %875 }
 0x402   : > { %v2727_v62 = vsel %vm566_vm1, %v2627_v10, %v876_v61  ;;  %2236 = vmatpush3.msra.mxu1 %v2722_v60  ;;  %v1064_v10 = vld [vmem:[%s3188_s5 + $0x38] sm:$0xff]  ;;  %v2444_v61 = vmov 0.0  }
 0x403   : > { %2237 = vmatprep.subr.mxu1 %v2727_v62 }
 0x404   : > { %2238 = vmatpush3.msra.mxu1 %v2727_v62 }
 0x405   : > { %2240 = vmatmul.mubr.msk.f32.vlgmr.msra.gmra.mxu1 %vm569_vm0, %v2637_v13 }
 0x406   : > { %2246 = vmatprep.mubr.msk.f32.mxu1 %vm569_vm0, %v2588_v4 }
 0x4c5   : > { %v2241_v63 = vpop.f32.mrf.mxu1 }
 0x4c6   : > { %1041 = vrot.lane.b32.xlu1 %v2241_v63, %s3220_s25  ;;  %2242 = vmatprep.subr.mxu1 %v2241_v63 }
 0x4c7   : > { %v949_v0 = vpop.f32.mrf.mxu1  ;;  %2243 = vmatpush3.msra.mxu1 %v2241_v63  ;;  %v1388_v63 = vld [vmem:[%s3190_s7 + $0x68] sm:$0xff] }
 0x4c8   : > { %1039 = vrot.lane.b32.xlu0 %v949_v0, %s3220_s25  ;;  %2244 = vmatprep.subr.mxu1 %v949_v0 }
 0x4c9   : > { %2245 = vmatpush3.msra.mxu1 %v949_v0  ;;  %v1387_v0 = vld [vmem:[%s3190_s7 + $0x60] sm:$0xff] }
 0x4ca   : > { %2247 = vmatmul.mubr.msk.f32.vlgmr.msra.gmra.mxu1 %vm569_vm0, %v2637_v13  ;;  %2249 = vmatprep.subr.msk.mxu1 %vm780_vm2, %v1070_v1 }
 0x4cb   : > { %2250 = vmatpush3.msk.msra.mxu1 %vm780_vm2, %v1070_v1  ;;  %v1386_v1 = vld [vmem:[%s3190_s7 + $0x58] sm:$0xff] }
 0x4cc   : > { %2251 = vmatprep.subr.mxu1 %v1069_v2 }
 0x4cd   : > { %2252 = vmatpush3.msra.mxu1 %v1069_v2  ;;  %v1385_v2 = vld [vmem:[%s3190_s7 + $0x50] sm:$0xff] }
 0x4ce   : > { %2253 = vmatprep.subr.mxu1 %v1068_v3 }
 0x4cf   : > { %2254 = vmatpush3.msra.mxu1 %v1068_v3  ;;  %v1384_v3 = vld [vmem:[%s3190_s7 + $0x48] sm:$0xff] }
 0x4d0   : > { %2255 = vmatprep.subr.mxu1 %v1067_v7 }
 0x4d1   : > { %2256 = vmatpush3.msra.mxu1 %v1067_v7  ;;  %v1383_v7 = vld [vmem:[%s3190_s7 + $0x40] sm:$0xff] }
 0x4d2   : > { %2257 = vmatprep.subr.mxu1 %v1066_v8 }
 0x4d3   : > { %2258 = vmatpush3.msra.mxu1 %v1066_v8  ;;  %v1382_v8 = vld [vmem:[%s3190_s7 + $0x38] sm:$0xff] }
 0x4d4   : > { %2259 = vmatprep.subr.mxu1 %v1065_v9 }
 0x4d5   : > { %2260 = vmatpush3.msra.mxu1 %v1065_v9  ;;  %v1381_v9 = vld [vmem:[%s3190_s7 + $0x30] sm:$0xff] }
 0x4d6   : > { %2261 = vmatprep.subr.mxu1 %v1064_v10 }
 0x4d7   : > { %2262 = vmatpush3.msra.mxu1 %v1064_v10  ;;  %v1380_v10 = vld [vmem:[%s3190_s7 + $0x28] sm:$0xff] }
 0x4d8   : > { %2263 = vmatprep.subr.mxu1 %v1063_v11 }
 0x4d9   : > { %2264 = vmatpush3.msra.mxu1 %v1063_v11  ;;  %v1379_v11 = vld [vmem:[%s3190_s7 + $0x20] sm:$0xff] }
 0x4da   : > { %2265 = vmatprep.subr.mxu1 %v1062_v12 }
 0x4db   : > { %2266 = vmatpush3.msra.mxu1 %v1062_v12  ;;  %v1378_v12 = vld [vmem:[%s3190_s7 + $0x18] sm:$0xff] }
 0x4dc   : > { %2267 = vmatprep.subr.mxu1 %v1061_v14 }
 0x4dd   : > { %2268 = vmatpush3.msra.mxu1 %v1061_v14  ;;  %v1377_v14 = vld [vmem:[%s3190_s7 + $0x10] sm:$0xff] }
 0x4de   : > { %2269 = vmatprep.subr.mxu1 %v1060_v15 }
 0x4df   : > { %2270 = vmatpush3.msra.mxu1 %v1060_v15  ;;  %v1376_v15 = vld [vmem:[%s3190_s7 + $0x8] sm:$0xff] }
 0x4e0   : > { %2271 = vmatprep.subr.mxu1 %v1059_v16 }
 0x4e1   : > { %2272 = vmatpush3.msra.mxu1 %v1059_v16  ;;  %v1375_v16 = vld [vmem:[%s3190_s7] sm:$0xff] }
 0x4e2   : > { %2273 = vmatprep.subr.mxu1 %v1058_v17 }
 0x4e3   : > { %2274 = vmatpush3.msra.mxu1 %v1058_v17  ;;  %v1398_v17 = vld [vmem:[%s3190_s7 + $0xb8] sm:$0xff] }
 0x4e4   : > { %2275 = vmatprep.subr.mxu1 %v1057_v18 }
 0x4e5   : > { %2276 = vmatpush3.msra.mxu1 %v1057_v18  ;;  %v1397_v18 = vld [vmem:[%s3190_s7 + $0xb0] sm:$0xff] }
 0x538   : > { %v1042_v25 = vpop.permute.xlu1 %1041 }
 0x539   : > { %v1054_v30 = vsel %vm746_vm3, %v2722_v60, %v1042_v25 }
 0x53a   : > { %v1040_v26 = vpop.permute.xlu0 %1039 }
 0x53b   : > { %v1053_v28 = vsel %vm746_vm3, %v2727_v62, %v1040_v26 }
 0x58a   : > { %v2248_v19 = vpop.f32.mrf.mxu1 }
 0x58b   : > { %v1034_v20 = vmul.f32 2.0, %v2248_v19  ;;  %v1396_v19 = vld [vmem:[%s3190_s7 + $0xa8] sm:$0xff] }
 0x58c   : > { %v1024_v21 = vpop.f32.mrf.mxu1 }
 0x58d   : > { %v1036_v22 = vsub.f32 %v1034_v20, %v2722_v60  ;;  %v1033_v23 = vmul.f32 2.0, %v1024_v21  ;;  %v1390_v60 = vld [vmem:[%s3190_s7 + $0x78] sm:$0xff]  ;;  %v1395_v20 = vld [vmem:[%s3190_s7 + $0xa0] sm:$0xff] }
 0x58e   : > { %v1394_v21 = vld [vmem:[%s3190_s7 + $0x98] sm:$0xff] }
 0x58f   : > { %v1035_v24 = vsub.f32 %v1033_v23, %v2727_v62  ;;  %1049 = vrot.lane.b32.xlu1 %v1036_v22, %s3221_s1  ;;  %v1389_v62 = vld [vmem:[%s3190_s7 + $0x70] sm:$0xff]  ;;  %v1392_v23 = vld [vmem:[%s3190_s7 + $0x88] sm:$0xff] }
 0x590   : > { %v1393_v22 = vld [vmem:[%s3190_s7 + $0x90] sm:$0xff] }
 0x591   : > { %1047 = vrot.lane.b32.xlu0 %v1035_v24, %s3221_s1  ;;  %v1391_v24 = vld [vmem:[%s3190_s7 + $0x80] sm:$0xff] }
 0x595   : > { %1166 = vrot.lane.b32.xlu0 %v2602_v5, %s2441_s22  ;;  %v2086_v5 = vld [vmem:[%s3189_s6] ss:$0 sm:$0xff] }
 0x599   : > { %1164 = vrot.lane.b32.xlu0 %v2607_v6, %s2441_s22 }
 0x601   : > { %v1050_v27 = vpop.permute.xlu1 %1049 }
 0x602   : > { %v1056_v32 = vsel %vm749_vm4, %v1054_v30, %v1050_v27 }
 0x603   : > { %v1048_v29 = vpop.permute.xlu0 %1047 }
 0x604   : > { %v1055_v31 = vsel %vm749_vm4, %v1053_v28, %v1048_v29 }
 0x605   : > { %2277 = vmatprep.mubr.msk.f32.mxu1 %vm773_vm5, %v1055_v31 }
 0x606   : > { %2278 = vmatmul.mubr.msk.f32.vlgmr.msra.gmra.mxu1 %vm773_vm5, %v1056_v32 }
 0x607   : > { %2298 = vmatprep.mubr.msk.f32.mxu1 %vm569_vm0, %v2588_v4  ;;  %v1167_v40 = vpop.permute.xlu0 %1166 }
 0x608   : > { %v1171_v43 = vmul.f32 %v2710_v55, %v1167_v40 }
 0x60b   : > { %v1165_v45 = vpop.permute.xlu0 %1164 }
 0x60c   : > { %v1170_v49 = vmul.f32 %v2714_v57, %v1165_v45 }
 0x6c6   : > { %v2279_v6 = vpop.f32.mrf.mxu1 }
 0x6c7   : > { %v1159_v33 = vadd.f32 %v2279_v6, %v2086_v5 }
 0x6c8   : > { %v1153_v34 = vpop.f32.mrf.mxu1 }
 0x6c9   : > { %2386 = vtanh.f32 %v1159_v33  ;;  %v1154_v35 = vadd.f32 %v2086_v5, %v1153_v34  ;;  %v2096_v33 = vld [vmem:[%s3191_s8] ss:$0 sm:$0xff] }
 0x6cb   : > { %2388 = vtanh.f32 %v1154_v35 }
 0x6d6   : > { %v2387_v36 = vpop.eup %2386 }
 0x6d7   : > { %1178 = vrot.lane.b32.xlu1 %v2387_v36, %s2441_s22 }
 0x6d8   : > { %v2389_v37 = vpop.eup %2388 }
 0x6db   : > { %1176 = vrot.lane.b32.xlu1 %v2389_v37, %s2441_s22 }
 0x6df   : > { %1204 = vrot.lane.b32.xlu1 %v2808_v38, %s2441_s22 }
 0x6e3   : > { %1202 = vrot.lane.b32.xlu1 %v2813_v39, %s2441_s22 }
 0x749   : > { %v1179_v42 = vpop.permute.xlu1 %1178 }
 0x74a   : > { %v1183_v44 = vmul.f32 %v1179_v42, %v1173_v41 }
 0x74c   : > { %v1185_v46 = vadd.f32 %v1183_v44, %v1171_v43 }
 0x74d   : > { %v1177_v48 = vpop.permute.xlu1 %1176 }
 0x74e   : > { %v1182_v50 = vmul.f32 %v1177_v48, %v1172_v47  ;;  %1190 = vrot.lane.b32.xlu0 %v1185_v46, %s3206_s20 }
 0x750   : > { %v1184_v51 = vadd.f32 %v1182_v50, %v1170_v49 }
 0x751   : > { %v2823_v52 = vpop.permute.xlu1 %1204 }
 0x752   : > { %1188 = vrot.lane.b32.xlu0 %v1184_v51, %s3206_s20  ;;  %s1914_s20 = scalar_lea.sflag [#allocation4], %s3225_s26 }
 0x755   : > { %v2839_v55 = vpop.permute.xlu1 %1202 }
 0x7c0   : > { %v2825_v53 = vpop.permute.xlu0 %1190 }
 0x7c1   : > { %1196 = vst.msk [vmem:[%s2828_s28 + $0x8] sm:$0xff] %vm1194_vm6, %v2825_v53  ;;  %v2836_v54 = vsel %vm1194_vm6, %v2825_v53, %v2823_v52 }
 0x7c2   : > { %2280 = vmatprep.subr.mxu0 %v2836_v54 }
 0x7c3   : > { %2281 = vmatpush3.msra.mxu0 %v2836_v54 }
 0x7c4   : > { %v2842_v56 = vpop.permute.xlu0 %1188 }
 0x7c5   : > { %1195 = vst.msk [vmem:[%s2828_s28] sm:$0xff] %vm1194_vm6, %v2842_v56  ;;  %v2850_v57 = vsel %vm1194_vm6, %v2842_v56, %v2839_v55 }
 0x7c6   : > { %2282 = vmatprep.subr.mxu0 %v2850_v57 }
 0x7c7   : > { %2283 = vmatpush3.msra.mxu0 %v2850_v57 }
 0x7c8   : > { %2285 = vmatmul.mubr.msk.f32.vlgmr.msra.gmra.mxu0 %vm569_vm0, %v2637_v13 }
 0x7c9   : > { %2291 = vmatprep.mubr.msk.f32.mxu0 %vm569_vm0, %v2588_v4 }
 0x888   : > { %v2286_v58 = vpop.f32.mrf.mxu0 }
 0x889   : > { %1368 = vrot.lane.b32.xlu1 %v2286_v58, %s3208_s27  ;;  %2287 = vmatprep.subr.mxu0 %v2286_v58 }
 0x88a   : > { %v1276_v59 = vpop.f32.mrf.mxu0  ;;  %2288 = vmatpush3.msra.mxu0 %v2286_v58 }
 0x88b   : > { %1366 = vrot.lane.b32.xlu0 %v1276_v59, %s3208_s27  ;;  %2289 = vmatprep.subr.mxu0 %v1276_v59 }
 0x88c   : > { %2290 = vmatpush3.msra.mxu0 %v1276_v59  ;;  %v1688_v59 = vld [vmem:[%s3192_s9 + $0x68] sm:$0xff] }
 0x88d   : > { %2292 = vmatmul.mubr.msk.f32.vlgmr.msra.gmra.mxu0 %vm569_vm0, %v2637_v13  ;;  %1412 = vmatprep.subr.mxu0 %v2444_v61 }
 0x88e   : > { %1413 = vmatpush1.msra.mxu0 %v1390_v60  ;;  %v1686_v60 = vld [vmem:[%s3192_s9 + $0x58] sm:$0xff] }
 0x88f   : > { %1414 = vmatprep.subr.mxu0 %v2444_v61 }
 0x890   : > { %1415 = vmatpush1.msra.mxu0 %v1389_v62  ;;  %v1685_v62 = vld [vmem:[%s3192_s9 + $0x50] sm:$0xff] }
 0x891   : > { %1416 = vmatprep.subr.mxu0 %v2444_v61 }
 0x892   : > { %1417 = vmatpush1.msra.mxu0 %v1388_v63  ;;  %v1684_v63 = vld [vmem:[%s3192_s9 + $0x48] sm:$0xff] }
 0x893   : > { %1418 = vmatprep.subr.mxu0 %v2444_v61 }
 0x894   : > { %1419 = vmatpush1.msra.mxu0 %v1387_v0  ;;  %v1683_v0 = vld [vmem:[%s3192_s9 + $0x40] sm:$0xff] }
 0x895   : > { %1420 = vmatprep.subr.mxu0 %v2444_v61 }
 0x896   : > { %1421 = vmatpush1.msra.mxu0 %v1386_v1  ;;  %v1682_v1 = vld [vmem:[%s3192_s9 + $0x38] sm:$0xff] }
 0x897   : > { %1422 = vmatprep.subr.mxu0 %v2444_v61 }
 0x898   : > { %1423 = vmatpush1.msra.mxu0 %v1385_v2  ;;  %v1681_v2 = vld [vmem:[%s3192_s9 + $0x30] sm:$0xff] }
 0x899   : > { %1424 = vmatprep.subr.mxu0 %v2444_v61 }
 0x89a   : > { %1425 = vmatpush1.msra.mxu0 %v1384_v3  ;;  %v1680_v3 = vld [vmem:[%s3192_s9 + $0x28] sm:$0xff] }
 0x89b   : > { %1426 = vmatprep.subr.mxu0 %v2444_v61 }
 0x89c   : > { %1427 = vmatpush1.msra.mxu0 %v1383_v7  ;;  %v1679_v7 = vld [vmem:[%s3192_s9 + $0x20] sm:$0xff] }
 0x89d   : > { %1428 = vmatprep.subr.mxu0 %v2444_v61 }
 0x89e   : > { %1429 = vmatpush1.msra.mxu0 %v1382_v8  ;;  %v1678_v8 = vld [vmem:[%s3192_s9 + $0x18] sm:$0xff] }
 0x89f   : > { %1430 = vmatprep.subr.mxu0 %v2444_v61 }
 0x8a0   : > { %1431 = vmatpush1.msra.mxu0 %v1381_v9  ;;  %v1677_v9 = vld [vmem:[%s3192_s9 + $0x10] sm:$0xff] }
 0x8a1   : > { %1432 = vmatprep.subr.mxu0 %v2444_v61 }
 0x8a2   : > { %1433 = vmatpush1.msra.mxu0 %v1380_v10  ;;  %v1676_v10 = vld [vmem:[%s3192_s9 + $0x8] sm:$0xff] }
 0x8a3   : > { %1434 = vmatprep.subr.mxu0 %v2444_v61 }
 0x8a4   : > { %1435 = vmatpush1.msra.mxu0 %v1379_v11  ;;  %v1675_v11 = vld [vmem:[%s3192_s9] sm:$0xff] }
 0x8a5   : > { %1436 = vmatprep.subr.mxu0 %v2444_v61 }
 0x8a6   : > { %1437 = vmatpush1.msra.mxu0 %v1378_v12  ;;  %v1698_v12 = vld [vmem:[%s3192_s9 + $0xb8] sm:$0xff] }
 0x8a7   : > { %1438 = vmatprep.subr.mxu0 %v2444_v61 }
 0x8a8   : > { %1439 = vmatpush1.msra.mxu0 %v1377_v14  ;;  %v1697_v14 = vld [vmem:[%s3192_s9 + $0xb0] sm:$0xff] }
 0x8a9   : > { %1440 = vmatprep.subr.mxu0 %v2444_v61 }
 0x8aa   : > { %1441 = vmatpush1.msra.mxu0 %v1376_v15  ;;  %v1696_v15 = vld [vmem:[%s3192_s9 + $0xa8] sm:$0xff] }
 0x8ab   : > { %1442 = vmatprep.subr.mxu0 %v2444_v61 }
 0x8ac   : > { %1443 = vmatpush1.msra.mxu0 %v1375_v16  ;;  %v1695_v16 = vld [vmem:[%s3192_s9 + $0xa0] sm:$0xff] }
 0x8ad   : > { %1460 = vmatprep.subr.mxu0 %v2444_v61 }
 0x8ae   : > { %1461 = vmatpush2.msra.mxu0 %v1398_v17  ;;  %v1694_v17 = vld [vmem:[%s3192_s9 + $0x98] sm:$0xff] }
 0x8af   : > { %1462 = vmatprep.subr.mxu0 %v2444_v61 }
 0x8b0   : > { %1463 = vmatpush2.msra.mxu0 %v1397_v18  ;;  %v1693_v18 = vld [vmem:[%s3192_s9 + $0x90] sm:$0xff] }
 0x8b1   : > { %1464 = vmatprep.subr.mxu0 %v2444_v61 }
 0x8b2   : > { %1465 = vmatpush2.msra.mxu0 %v1396_v19  ;;  %v1692_v19 = vld [vmem:[%s3192_s9 + $0x88] sm:$0xff] }
 0x8b3   : > { %1466 = vmatprep.subr.mxu0 %v2444_v61 }
 0x8b4   : > { %1467 = vmatpush2.msra.mxu0 %v1395_v20  ;;  %v1691_v20 = vld [vmem:[%s3192_s9 + $0x80] sm:$0xff] }
 0x8b5   : > { %1468 = vmatprep.subr.mxu0 %v2444_v61 }
 0x8b6   : > { %1469 = vmatpush2.msra.mxu0 %v1394_v21 }
 0x8b7   : > { %1470 = vmatprep.subr.mxu0 %v2444_v61 }
 0x8b8   : > { %1471 = vmatpush2.msra.mxu0 %v1393_v22 }
 0x8b9   : > { %1472 = vmatprep.subr.mxu0 %v2444_v61 }
 0x8ba   : > { %1473 = vmatpush2.msra.mxu0 %v1392_v23 }
 0x8bb   : > { %1474 = vmatprep.subr.mxu0 %v2444_v61 }
 0x8bc   : > { %1475 = vmatpush2.msra.mxu0 %v1391_v24 }
 0x8fb   : > { %v1369_v5 = vpop.permute.xlu1 %1368 }
 0x8fc   : > { %v1374_v6 = vsel %vm1372_vm7, %v2836_v54, %v1369_v5 }
 0x8fd   : > { %v1367_v29 = vpop.permute.xlu0 %1366 }
 0x8fe   : > { %v1373_v31 = vsel %vm1372_vm7, %v2850_v57, %v1367_v29 }
 0x94d   : > { %v2293_v25 = vpop.f32.mrf.mxu0 }
 0x94e   : > { %v1361_v27 = vmul.f32 2.0, %v2293_v25 }
 0x94f   : > { %v1351_v26 = vpop.f32.mrf.mxu0 }
 0x950   : > { %v1360_v28 = vmul.f32 2.0, %v1351_v26  ;;  %v1363_v32 = vsub.f32 %v1361_v27, %v2836_v54 }
 0x952   : > { %v1362_v30 = vsub.f32 %v1360_v28, %v2850_v57 }
 0x954   : > { %2097 = vmatprep.mubr.msk.f32.mxu0 %vm1372_vm7, %v1362_v30  ;;  %v2105_v30 = vld [vmem:[%s3193_s10] ss:$0 sm:$0xff] }
 0x955   : > { %1477 = vmatmul.mubr.f32.vlgmr.msra.gmra.mxu0 %v1373_v31 }
 0x956   : > { %2098 = vmatprep.mubr.msk.f32.mxu0 %vm1372_vm7, %v1363_v32 }
 0x959   : > { %1482 = vmatmul.mubr.f32.gmra.mxu0 %v1374_v6 }
 0xa15   : > { %v1478_v34 = vpop.f32.mrf.mxu0 }
 0xa16   : > { %v1479_v35 = vadd.f32 %v2096_v33, %v1478_v34 }
 0xa17   : > { %v1480_v36 = vpop.f32.mrf.mxu0 }
 0xa18   : > { %v2099_v37 = vmul.f32 -1.442695, %v1479_v35  ;;  %v1819_v35 = vld [vmem:[%s3194_s11 + $0x18] sm:$0xff]  ;;  %v1818_v36 = vld [vmem:[%s3194_s11 + $0x10] sm:$0xff] }
 0xa19   : > { %v1483_v40 = vpop.f32.mrf.mxu0  ;;  %2308 = vmatprep.subr.mxu0 %v1819_v35 }
 0xa1a   : > { %2390 = vpow2.f32 %v2099_v37  ;;  %v1484_v41 = vadd.f32 %v2096_v33, %v1483_v40  ;;  %2309 = vmatpush3.msra.mxu0 %v1819_v35 }
 0xa1b   : > { %v1485_v42 = vpop.f32.mrf.mxu0  ;;  %2310 = vmatprep.subr.mxu0 %v1818_v36 }
 0xa1c   : > { %v2100_v43 = vmul.f32 -1.442695, %v1484_v41  ;;  %2311 = vmatpush3.msra.mxu0 %v1818_v36  ;;  %v1817_v41 = vld [vmem:[%s3194_s11 + $0x8] sm:$0xff]  ;;  %v1816_v42 = vld [vmem:[%s3194_s11] sm:$0xff] }
 0xa1d   : > { %2312 = vmatprep.subr.mxu0 %v1817_v41 }
 0xa1e   : > { %2392 = vpow2.f32 %v2100_v43  ;;  %2313 = vmatpush3.msra.mxu0 %v1817_v41 }
 0xa1f   : > { %2314 = vmatprep.subr.mxu0 %v1816_v42 }
 0xa20   : > { %2315 = vmatpush3.msra.mxu0 %v1816_v42 }
 0xa27   : > { %v2391_v44 = vpop.eup %2390 }
 0xa28   : > { %v1493_v45 = vadd.f32 1.0, %v2391_v44 }
 0xa2a   : > { %2394 = vrcp.f32 %v1493_v45 }
 0xa2b   : > { %v2393_v46 = vpop.eup %2392 }
 0xa2c   : > { %v1494_v47 = vadd.f32 1.0, %v2393_v46 }
 0xa2e   : > { %2396 = vrcp.f32 %v1494_v47 }
 0xa37   : > { %v2969_v48 = vpop.eup %2394 }
 0xa38   : > { %v1499_v49 = vmul.f32 %v2969_v48, %v2813_v39  ;;  %v1791_v43 = vsub.f32 1.0, %v2969_v48  ;;  %v1789_v45 = vmul.f32 %v2969_v48, %v2839_v55 }
 0xa3a   : > { %1503 = vrot.lane.b32.xlu1 %v1499_v49, %s2441_s22 }
 0xa3b   : > { %v2974_v50 = vpop.eup %2396 }
 0xa3c   : > { %v1500_v51 = vmul.f32 %v2974_v50, %v2808_v38  ;;  %v1792_v49 = vsub.f32 1.0, %v2974_v50 }
 0xa3e   : > { %1505 = vrot.lane.b32.xlu0 %v1500_v51, %s2441_s22 }
 0xaac   : > { %v1504_v54 = vpop.permute.xlu1 %1503 }
 0xaad   : > { %v2986_v39 = vsel %vm1194_vm6, %v2842_v56, %v1504_v54  ;;  %v1690_v56 = vld [vmem:[%s3192_s9 + $0x78] sm:$0xff]  ;;  %v1790_v54 = vmul.f32 %v2974_v50, %v2823_v52  ;;  %v2110_v52 = vld [vmem:[%s3195_s12] ss:$0 sm:$0xff] }
 0xab0   : > { %v1506_v57 = vpop.permute.xlu0 %1505 }
 0xab1   : > { %v2981_v58 = vsel %vm1194_vm6, %v2825_v53, %v1506_v57 }
 0xab2   : > { %2294 = vmatprep.subr.mxu1 %v2981_v58 }
 0xab3   : > { %2295 = vmatpush3.msra.mxu1 %v2981_v58 }
 0xab4   : > { %2296 = vmatprep.subr.mxu1 %v2986_v39 }
 0xab5   : > { %2297 = vmatpush3.msra.mxu1 %v2986_v39 }
 0xab6   : > { %2299 = vmatmul.mubr.msk.f32.vlgmr.msra.gmra.mxu1 %vm569_vm0, %v2637_v13 }
 0xab7   : > { %2305 = vmatprep.mubr.msk.f32.mxu1 %vm569_vm0, %v2588_v4  ;;  %v1689_v4 = vld [vmem:[%s3192_s9 + $0x70] sm:$0xff] }
 0xb76   : > { %v2300_v38 = vpop.f32.mrf.mxu1 }
 0xb77   : > { %1669 = vrot.lane.b32.xlu1 %v2300_v38, %s3222_s21  ;;  %2301 = vmatprep.subr.mxu1 %v2300_v38 }
 0xb78   : > { %v1577_v53 = vpop.f32.mrf.mxu1  ;;  %2302 = vmatpush3.msra.mxu1 %v2300_v38 }
 0xb79   : > { %1667 = vrot.lane.b32.xlu0 %v1577_v53, %s3222_s21  ;;  %2303 = vmatprep.subr.mxu1 %v1577_v53  ;;  %s549_s21 = scalar_lea.vmem %s3196_s13, %s3224_s0 }
 0xb7a   : > { %2304 = vmatpush3.msra.mxu1 %v1577_v53 }
 0xb7b   : > { %2306 = vmatmul.mubr.msk.f32.vlgmr.msra.gmra.mxu1 %vm569_vm0, %v2637_v13  ;;  %1712 = vmatprep.subr.mxu1 %v2444_v61  ;;  %v1687_v13 = vld [vmem:[%s3192_s9 + $0x60] sm:$0xff] }
 0xb7c   : > { %1713 = vmatpush1.msra.mxu1 %v1690_v56 }
 0xb7d   : > { %1714 = vmatprep.subr.mxu1 %v2444_v61 }
 0xb7e   : > { %1715 = vmatpush1.msra.mxu1 %v1689_v4 }
 0xb7f   : > { %1716 = vmatprep.subr.mxu1 %v2444_v61 }
 0xb80   : > { %1717 = vmatpush1.msra.mxu1 %v1688_v59 }
 0xb81   : > { %1718 = vmatprep.subr.mxu1 %v2444_v61 }
 0xb82   : > { %1719 = vmatpush1.msra.mxu1 %v1687_v13 }
 0xb83   : > { %1720 = vmatprep.subr.mxu1 %v2444_v61 }
 0xb84   : > { %1721 = vmatpush1.msra.mxu1 %v1686_v60 }
 0xb85   : > { %1722 = vmatprep.subr.mxu1 %v2444_v61 }
 0xb86   : > { %1723 = vmatpush1.msra.mxu1 %v1685_v62 }
 0xb87   : > { %1724 = vmatprep.subr.mxu1 %v2444_v61 }
 0xb88   : > { %1725 = vmatpush1.msra.mxu1 %v1684_v63 }
 0xb89   : > { %1726 = vmatprep.subr.mxu1 %v2444_v61 }
 0xb8a   : > { %1727 = vmatpush1.msra.mxu1 %v1683_v0 }
 0xb8b   : > { %1728 = vmatprep.subr.mxu1 %v2444_v61 }
 0xb8c   : > { %1729 = vmatpush1.msra.mxu1 %v1682_v1 }
 0xb8d   : > { %1730 = vmatprep.subr.mxu1 %v2444_v61 }
 0xb8e   : > { %1731 = vmatpush1.msra.mxu1 %v1681_v2 }
 0xb8f   : > { %1732 = vmatprep.subr.mxu1 %v2444_v61 }
 0xb90   : > { %1733 = vmatpush1.msra.mxu1 %v1680_v3 }
 0xb91   : > { %1734 = vmatprep.subr.mxu1 %v2444_v61 }
 0xb92   : > { %1735 = vmatpush1.msra.mxu1 %v1679_v7 }
 0xb93   : > { %1736 = vmatprep.subr.mxu1 %v2444_v61 }
 0xb94   : > { %1737 = vmatpush1.msra.mxu1 %v1678_v8 }
 0xb95   : > { %1738 = vmatprep.subr.mxu1 %v2444_v61 }
 0xb96   : > { %1739 = vmatpush1.msra.mxu1 %v1677_v9 }
 0xb97   : > { %1740 = vmatprep.subr.mxu1 %v2444_v61 }
 0xb98   : > { %1741 = vmatpush1.msra.mxu1 %v1676_v10 }
 0xb99   : > { %1742 = vmatprep.subr.mxu1 %v2444_v61 }
 0xb9a   : > { %1743 = vmatpush1.msra.mxu1 %v1675_v11 }
 0xb9b   : > { %1760 = vmatprep.subr.mxu1 %v2444_v61 }
 0xb9c   : > { %1761 = vmatpush2.msra.mxu1 %v1698_v12 }
 0xb9d   : > { %1762 = vmatprep.subr.mxu1 %v2444_v61 }
 0xb9e   : > { %1763 = vmatpush2.msra.mxu1 %v1697_v14 }
 0xb9f   : > { %1764 = vmatprep.subr.mxu1 %v2444_v61 }
 0xba0   : > { %1765 = vmatpush2.msra.mxu1 %v1696_v15 }
 0xba1   : > { %1766 = vmatprep.subr.mxu1 %v2444_v61 }
 0xba2   : > { %1767 = vmatpush2.msra.mxu1 %v1695_v16 }
 0xba3   : > { %1768 = vmatprep.subr.mxu1 %v2444_v61 }
 0xba4   : > { %1769 = vmatpush2.msra.mxu1 %v1694_v17 }
 0xba5   : > { %1770 = vmatprep.subr.mxu1 %v2444_v61 }
 0xba6   : > { %1771 = vmatpush2.msra.mxu1 %v1693_v18 }
 0xba7   : > { %1772 = vmatprep.subr.mxu1 %v2444_v61 }
 0xba8   : > { %1773 = vmatpush2.msra.mxu1 %v1692_v19 }
 0xba9   : > { %1774 = vmatprep.subr.mxu1 %v2444_v61 }
 0xbaa   : > { %1775 = vmatpush2.msra.mxu1 %v1691_v20 }
 0xbe9   : > { %v1670_v29 = vpop.permute.xlu1 %1669 }
 0xbea   : > { %v1674_v61 = vsel %vm1372_vm7, %v2981_v58, %v1670_v29 }
 0xbeb   : > { %v1668_v25 = vpop.permute.xlu0 %1667 }
 0xbec   : > { %v1673_v27 = vsel %vm1372_vm7, %v2986_v39, %v1668_v25 }
 0xc3b   : > { %v2307_v21 = vpop.f32.mrf.mxu1 }
 0xc3c   : > { %v1662_v23 = vmul.f32 2.0, %v2307_v21 }
 0xc3d   : > { %v1652_v22 = vpop.f32.mrf.mxu1 }
 0xc3e   : > { %v1661_v24 = vmul.f32 2.0, %v1652_v22  ;;  %v1664_v28 = vsub.f32 %v1662_v23, %v2981_v58 }
 0xc40   : > { %v1663_v26 = vsub.f32 %v1661_v24, %v2986_v39 }
 0xc42   : > { %2106 = vmatprep.mubr.msk.f32.mxu1 %vm1372_vm7, %v1663_v26 }
 0xc43   : > { %1777 = vmatmul.mubr.f32.vlgmr.msra.gmra.mxu1 %v1673_v27 }
 0xc44   : > { %2107 = vmatprep.mubr.msk.f32.mxu1 %vm1372_vm7, %v1664_v28 }
 0xc47   : > { %1782 = vmatmul.mubr.f32.gmra.mxu1 %v1674_v61 }
 0xd03   : > { %v1778_v31 = vpop.f32.mrf.mxu1 }
 0xd04   : > { %v1779_v32 = vadd.f32 %v2105_v30, %v1778_v31 }
 0xd05   : > { %v1780_v5 = vpop.f32.mrf.mxu1 }
 0xd06   : > { %2398 = vtanh.f32 %v1779_v32 }
 0xd07   : > { %v1783_v6 = vpop.f32.mrf.mxu1 }
 0xd08   : > { %v1784_v33 = vadd.f32 %v2105_v30, %v1783_v6 }
 0xd09   : > { %v1785_v34 = vpop.f32.mrf.mxu1 }
 0xd0a   : > { %2400 = vtanh.f32 %v1784_v33 }
 0xd13   : > { %v2399_v37 = vpop.eup %2398 }
 0xd14   : > { %1795 = vrot.lane.b32.xlu0 %v2399_v37, %s2441_s22 }
 0xd17   : > { %v2401_v40 = vpop.eup %2400 }
 0xd18   : > { %1797 = vrot.lane.b32.xlu1 %v2401_v40, %s2441_s22  ;;  %s3223_s22 = smov 96  }
 0xd86   : > { %v1796_v44 = vpop.permute.xlu0 %1795 }
 0xd87   : > { %v1801_v46 = vmul.f32 %v1796_v44, %v1791_v43 }
 0xd89   : > { %v1803_v47 = vadd.f32 %v1801_v46, %v1789_v45 }
 0xd8a   : > { %v1798_v51 = vpop.permute.xlu1 %1797 }
 0xd8b   : > { %v1802_v57 = vmul.f32 %v1798_v51, %v1792_v49  ;;  %1807 = vrot.lane.b32.xlu0 %v1803_v47, %s3223_s22 }
 0xd8d   : > { %v1804_v58 = vadd.f32 %v1802_v57, %v1790_v54 }
 0xd8f   : > { %1809 = vrot.lane.b32.xlu1 %v1804_v58, %s3223_s22 }
 0xdfd   : > { %v1808_v39 = vpop.permute.xlu0 %1807 }
 0xdfe   : > { %2108 = vst.msk [vmem:[%s2828_s28 + $0x10] sm:$0xff] %vm1194_vm6, %v1808_v39  ;;  %2316 = vmatprep.mubr.msk.f32.mxu0 %vm1194_vm6, %v1808_v39 }
 0xe01   : > { %v1810_v55 = vpop.permute.xlu1 %1809 }
 0xe02   : > { %2109 = vst.msk [vmem:[%s2828_s28 + $0x18] sm:$0xff] %vm1194_vm6, %v1810_v55  ;;  %2317 = vmatmul.mubr.msk.f32.vlgmr.msra.gmra.mxu0 %vm1194_vm6, %v1810_v55 }
 0xec2   : > { %v2318_v48 = vpop.f32.mrf.mxu0 }
 0xec3   : > { %v1903_v53 = vadd.f32 %v2318_v48, %v2110_v52 }
 0xec4   : > { %v1897_v50 = vpop.f32.mrf.mxu0 }
 0xec5   : > { %v1898_v38 = vadd.f32 %v2110_v52, %v1897_v50  ;;  %1907 = vst.msk [vmem:[%s549_s21 + $0x8] sm:$0xff] %vm566_vm1, %v1903_v53 }
 0xec7   : > { %1906 = vst.msk [vmem:[%s549_s21] sm:$0xff] %vm566_vm1, %v1898_v38 }
 0xec8   : > { %s2119_s18 = sshll.u32 %s2548_s17, 8  ;;  %s1941_s22 = sshll.u32 %s2828_s28, 4  ;;  %s1942_s22 = int_to_ptr.vmem [resolvable:$true] %s1941_s22 }
 0xec9   : > { %s1930_s0 = scalar_lea.hbm %s3197_s14, %s2119_s18  ;;  %s2445_s27 = smov 256  }
 0xeca   : > { %2319 = sst [smem:[#allocation6]] (%p2566_p6), %s2445_s27  ;;  %s2446_s25 = smov 512  }
 0xecb   : > { %2320 = sst [smem:[#allocation6 + $0x1]] (%p2566_p6), %s2446_s25  ;;  %s2447_s21 = smov 2  }
 0xecc   : > { %2321 = sst [smem:[#allocation6 + $0x2]] (%p2566_p6), %s2447_s21  ;;  %s2448_s26 = smov 128  }
 0xecd   : > { %2322 = sst [smem:[#allocation6 + $0x3]] (%p2566_p6), %s2448_s26  ;;  %s2449_s17 = smov 8  }
 0xece   : > { %2323 = sst [smem:[#allocation6 + $0x4]] (%p2566_p6), %s2448_s26  ;;  %s2450_s28 = smov 131072  }
 0xecf   : > { %2324 = sst [smem:[#allocation6 + $0x5]] (%p2566_p6), %s2449_s17  ;;  %s2451_s18 = smov 0  }
 0xed0   : > { %2325 = dma.general (%p2566_p6), %s1942_s22, 512, %s1930_s0, %s1914_s20, %s2450_s28, [#allocation6], %s2451_s18, 0  }
 0xed1 PF: > { %s1977_s2 = sand.u32 1, %s2424_s29   ;;  %p2328_p0 = pnand %p2061_p9, %p2570_p8 }
 0xed2   : > { %s1978_s1 = scalar_lea.sflag [#allocation4], %s1977_s2 }
 0xed3   : > { %p2329_p1 = pneg %p2328_p0 }
 0xed5   : > { %2419 = dma.done.wait (%p2329_p1), %s1978_s1, 512  }
 0xed6   : > { %2421 = vsyncadd (%p2329_p1), %s1978_s1, 4294966784  ;;  %s3226_s27 = sld [smem:[#allocation8_spill]]  ;;  %p25_p2 = scmp.ge.s32.totalorder %s2552_s19, 4  }
 0xed7   : > { %s3227_s29 = smov %s2428_s30  ;;  %s3228_s30 = smov %s2432_s15 }
 0xed8   : > { %s3230_s16 = smov %s2552_s19  ;;  %27 = sbr.rel (!%p25_p2) target bundleno = 7 (0x7), region = 172 }
 0xedc   : > { %s3229_s15 = smov %s3226_s27 }
 0xedd   :  { %1983 = vsyncpa [#allocation4], 1 }
 0xede   :  { %1985 = vsyncpa [#allocation4 + $0x1], 1 }

</bundles_post_ra>
